<compile_context>
chip_gen: v7x
topology: tpu7x:2x2x1
jax: 0.10.0
libtpu: 0.0.40
codegen_flags: <defaults>
</compile_context>

<pallas_src>
import functools

import numpy as np
import jax
import jax.numpy as jnp
from jax.experimental import pallas as pl
from jax.experimental.pallas import tpu as pltpu

# ---------------- model hyper-parameters (small, consistent with the module) ----------
CATEGORIES = (3, 4, 5)           # -> num_categories = 3
NUM_SPECIAL_TOKENS = 2
NUM_CONTINUOUS = 4
DIM = 32                         # token embedding dim
HEADS = 4
DIM_OUT = 1
CROSS_FF_MULT = 2
DIM2 = 256                       # d_cross = dim2 (GraphModel channels)
BATCH = 2

NUM_CATEGORIES = len(CATEGORIES)
TOTAL_TOKENS = sum(CATEGORIES) + NUM_SPECIAL_TOKENS      # 14
TOTAL_PAD = 16                                           # padded to sublane quantum
NUM_CONT_PAD = 8
FF_DIM = DIM * CROSS_FF_MULT                             # 64
N_TOKENS = NUM_CATEGORIES + NUM_CONTINUOUS               # 7
TAB_COLS = 8                                             # merged tabular slab: xn|xc|0

BM_MAX = 256        # max batch rows per grid step (v6e/v7x MXU geometry; 128 ok on v5e)

# categories_offset is a deterministic function of the hyper-parameters -> bake as
# static constants (matches F.pad(...).cumsum()[:-1] in the module).
_offs = np.cumsum([NUM_SPECIAL_TOKENS] + list(CATEGORIES))[:-1]
CATEG_OFFSETS = tuple(int(o) for o in _offs)             # (2, 5, 9)

# ---- packed-parameter slab layout ----
# w32 slab: everything with a 32-wide trailing dim, rows 8-aligned per section.
ROW_EMB = 0                                  # [16, 32]  emb table (x 1/7), 2 zero rows
ROW_NUMW = TOTAL_PAD                         # [8, 32]   num_w (x 1/7), 4 zero rows
ROW_W2 = ROW_NUMW + NUM_CONT_PAD             # = 24 (also width of fused token operand)
ROW_WVO = ROW_W2 + FF_DIM                    # w2 occupies [24, 88)
W32_ROWS = ROW_WVO + DIM2                    # wvo = wv@wo occupies [88, 344)

# w64 slab: 64-wide trailing dim (ln1-folded w1 + all bias / logits vector rows).
ROW_W1 = 0                                   # [32, 64]
ROW_VEC = DIM                                # vector rows start at 32
VEC_ROWS = 8                                 # 5 real + 3 zero pad
W64_ROWS = ROW_VEC + VEC_ROWS                # 40
W64_COLS = FF_DIM                            # 64
# vec-row order: 0 b_tc (= sum(num_b)/7 + bv@wo+bo) | 1 b1' (= ln1_b@w1 + b1)
#                2 b2 | 3 wl' (= ln2_g * wl.T) | 4 bl' (= ln2_b@wl + bl)


def _normalize(x, eps=1e-5):
    """LayerNorm without affine (gains/biases are folded into adjacent weights)."""
    mu = jnp.mean(x, axis=-1, keepdims=True)
    xc = x - mu
    var = jnp.mean(xc * xc, axis=-1, keepdims=True)
    return xc * jax.lax.rsqrt(var + eps)


def _layer_norm(x, g, b, eps=1e-5):
    return _normalize(x, eps) * g + b


# --------------------------------- Pallas kernel ---------------------------------------
def fused_forward_kernel(tab_ref, cond_ref, w32_ref, w64_ref, out_ref):
    f32 = jnp.float32
    bm = tab_ref.shape[0]                                             # block batch rows

    tab = tab_ref[...]                                                # [bm, 8] f32
    xc = tab[:, NUM_CONTINUOUS:NUM_CONTINUOUS + NUM_CATEGORIES].astype(jnp.int32)

    # Fused token operand: lanes 0..15 = one-hot counts of categorical token ids,
    # lanes 16..19 = raw continuous values, lanes 20..23 = zero (slab rows are zero too).
    # Padded batch rows may create spurious one-hot hits at rows 2/5/9 -> harmless, the
    # corresponding output rows are never read back (sliced / masked away).
    iota = jax.lax.broadcasted_iota(jnp.int32, (bm, ROW_W2), 1)
    op = jnp.zeros((bm, ROW_W2), f32)
    for c in range(NUM_CATEGORIES):
        op = op + (iota == (xc[:, c:c + 1] + CATEG_OFFSETS[c])).astype(f32)
    for j in range(NUM_CONTINUOUS):
        op = jnp.where(iota == (ROW_NUMW + j), tab[:, j:j + 1], op)

    vec = w64_ref[ROW_VEC:W64_ROWS, :]                                # [8, 64]

    # token mean over the 7 tokens: the 1/7 scale is folded into the emb/num_w slab rows
    # and sum(num_b)/7 is folded (with bvo) into vec row 0.
    x = jnp.dot(op, w32_ref[0:ROW_W2, :], preferred_element_type=f32)          # [bm, D]

    # cross attention + residual: q/kv sequences have length 1, so the softmax over a
    # single key is identically 1 and the q/k projections cancel; the block reduces to
    # out_proj(v) with wv@wo and bv@wo+bo pre-fused offline.
    x = x + jnp.dot(cond_ref[...], w32_ref[ROW_WVO:W32_ROWS, :],
                    preferred_element_type=f32)
    x = x + vec[0:1, :DIM]

    # FeedForward: LN -> Linear -> GELU(erf) -> (Dropout eval: id) -> Linear, + residual.
    # ln1_g / ln1_b are folded into w1 / b1 offline, so only the normalize remains.
    h = _normalize(x)
    h = (jnp.dot(h, w64_ref[ROW_W1:ROW_W1 + DIM, :], preferred_element_type=f32)
         + vec[1:2, :])                                               # [bm, FF_DIM]
    h = 0.5 * h * (1.0 + jax.lax.erf(h * np.float32(1.0 / np.sqrt(2.0))))
    h = (jnp.dot(h, w32_ref[ROW_W2:ROW_WVO, :], preferred_element_type=f32)
         + vec[2:3, :DIM])                                            # [bm, D]
    x = h + x

    # to_logits: LN (affine folded into wl/bl) -> 1-wide Linear as VPU mul + lane reduce.
    y = _normalize(x)
    out_ref[...] = (jnp.sum(y * vec[3:4, :DIM], axis=-1, keepdims=True)
                    + vec[4:5, 0:1])


# --------------------------------- parameter packing -----------------------------------
def pack_params(p):
    """One-time offline packing / algebraic folding into two lane-dense slabs."""
    f32 = jnp.float32
    inv_n = np.float32(1.0 / N_TOKENS)

    emb16 = jnp.zeros((TOTAL_PAD, DIM), f32).at[:TOTAL_TOKENS].set(p["emb_table"]) * inv_n
    numw8 = jnp.zeros((NUM_CONT_PAD, DIM), f32).at[:NUM_CONTINUOUS].set(p["num_w"]) * inv_n
    wvo = p["wv"] @ p["wo"]                                           # [DIM2, D]
    w32 = jnp.concatenate([emb16, numw8, p["w2"], wvo], axis=0)       # [344, 32]

    # fold LayerNorm affines into the adjacent matmuls
    w1p = p["ln1_g"].reshape(DIM, 1) * p["w1"]                        # [32, 64]
    b1p = p["ln1_b"] @ p["w1"] + p["b1"]                              # [1, 64]
    wlp = p["ln2_g"] * p["wl"].T                                      # [1, 32]
    blp = p["ln2_b"] @ p["wl"] + p["bl"]                              # [1, 1]
    bvo = p["bv"] @ p["wo"] + p["bo"]                                 # [1, 32]
    b_tc = jnp.sum(p["num_b"], axis=0, keepdims=True) * inv_n + bvo   # [1, 32]

    def row64(v):
        v = jnp.asarray(v, f32).reshape(1, -1)
        return jnp.pad(v, ((0, 0), (0, W64_COLS - v.shape[1])))

    vec_rows = [b_tc, b1p, p["b2"], wlp, blp]
    vec = jnp.concatenate([row64(r) for r in vec_rows]
                          + [jnp.zeros((VEC_ROWS - len(vec_rows), W64_COLS), f32)],
                          axis=0)                                     # [8, 64]
    w64 = jnp.concatenate([w1p, vec], axis=0)                         # [40, 64]
    return w32, w64


# --------------------------------- wrapper ---------------------------------------------
def _round_up(x, m):
    return ((x + m - 1) // m) * m


def _pick_block(b8):
    """Batch rows per grid step: big MXU-friendly blocks, grid >= 2 when possible."""
    if b8 >= 2 * BM_MAX:
        return BM_MAX
    if b8 >= 16:
        return _round_up((b8 + 1) // 2, 8)      # two blocks -> both v7x TensorCores
    return b8


@jax.jit
def graph_mamba9_forward(x_categ, x_numer, condition, w32, w64):
    B = x_categ.shape[0]
    b8 = _round_up(B, 8)

    # Merge the two tiny tabular inputs into one narrow f32 slab [xn(4) | xc(3) | 0]
    # (category ids < 6 are exact in f32) -> one DMA instead of two per grid step.
    tab = jnp.concatenate(
        [x_numer.astype(jnp.float32), x_categ.astype(jnp.float32),
         jnp.zeros((B, TAB_COLS - NUM_CONTINUOUS - NUM_CATEGORIES), jnp.float32)],
        axis=-1)

    cond = condition.astype(jnp.float32)
    if b8 != B:
        # Only ragged (non-multiple-of-8) batches pay this copy; for B % 8 == 0 the big
        # [B, 256] condition goes straight into the kernel with no extra HBM pass.
        tab = jnp.pad(tab, ((0, b8 - B), (0, 0)))
        cond = jnp.pad(cond, ((0, b8 - B), (0, 0)))

    bm = _pick_block(b8)
    grid = pl.cdiv(b8, bm)

    out = pl.pallas_call(
        fused_forward_kernel,
        out_shape=jax.ShapeDtypeStruct((b8, DIM_OUT), jnp.float32),
        grid=(grid,),
        in_specs=[
            pl.BlockSpec((bm, TAB_COLS), lambda i: (i, 0)),
            pl.BlockSpec((bm, DIM2), lambda i: (i, 0)),
            pl.BlockSpec((W32_ROWS, DIM), lambda i: (0, 0)),         # grid-invariant
            pl.BlockSpec((W64_ROWS, W64_COLS), lambda i: (0, 0)),    # grid-invariant
        ],
        out_specs=pl.BlockSpec((bm, DIM_OUT), lambda i: (i, 0)),
        compiler_params=pltpu.CompilerParams(dimension_semantics=("parallel",)),
    )(tab, cond, w32, w64)
    return out[:B]


# --------------------------------- reference (pure JAX) --------------------------------
def reference_forward(x_categ, x_numer, condition, params):
    """Un-fused reference: real embedding gather + full multi-head cross attention."""
    idx = x_categ + params["categories_offset"][None, :]
    categ_emb = params["emb_table"][idx]                              # [B, 3, D]
    numer = x_numer[:, :, None] * params["num_w"][None] + params["num_b"][None]
    tokens = jnp.concatenate([categ_emb, numer], axis=1)              # [B, 7, D]
    x = jnp.mean(tokens, axis=1, keepdims=True)                       # [B, 1, D]

    B = x.shape[0]
    cond = condition[:, None, :]                                      # [B, 1, DIM2]
    q = x @ params["wq"] + params["bq"]
    k = cond @ params["wk"] + params["bk"]
    v = cond @ params["wv"] + params["bv"]
    dh = DIM // HEADS
    q = q.reshape(B, 1, HEADS, dh).transpose(0, 2, 1, 3)
    k = k.reshape(B, 1, HEADS, dh).transpose(0, 2, 1, 3)
    v = v.reshape(B, 1, HEADS, dh).transpose(0, 2, 1, 3)
    att = jnp.einsum("bhqd,bhkd->bhqk", q, k) / np.sqrt(dh)
    att = jax.nn.softmax(att, axis=-1)                                # length-1 -> 1.0
    o = jnp.einsum("bhqk,bhkd->bhqd", att, v)
    o = o.transpose(0, 2, 1, 3).reshape(B, 1, DIM)
    x = o @ params["wo"] + params["bo"] + x

    h = _layer_norm(x, params["ln1_g"], params["ln1_b"])
    h = h @ params["w1"] + params["b1"]
    h = 0.5 * h * (1.0 + jax.scipy.special.erf(h / np.sqrt(2.0)))
    h = h @ params["w2"] + params["b2"]
    x = (h + x)[:, 0, :]

    y = _layer_norm(x, params["ln2_g"], params["ln2_b"])
    return y @ params["wl"] + params["bl"]


# --------------------------------- parameter init --------------------------------------
def init_params(key):
    ks = iter(jax.random.split(key, 32))

    def lin(fin, fout, scale=None):
        s = scale if scale is not None else 1.0 / np.sqrt(fin)
        w = jax.random.normal(next(ks), (fin, fout), jnp.float32) * s
        b = jax.random.normal(next(ks), (1, fout), jnp.float32) * 0.01
        return w, b

    p = {}
    p["categories_offset"] = jnp.asarray(CATEG_OFFSETS, jnp.int32)     # [2, 5, 9]
    p["emb_table"] = jax.random.normal(next(ks), (TOTAL_TOKENS, DIM), jnp.float32) * 0.02
    p["num_w"] = jax.random.normal(next(ks), (NUM_CONTINUOUS, DIM), jnp.float32)
    p["num_b"] = jax.random.normal(next(ks), (NUM_CONTINUOUS, DIM), jnp.float32)

    p["wq"], p["bq"] = lin(DIM, DIM)
    p["wk"], p["bk"] = lin(DIM2, DIM)
    p["wv"], p["bv"] = lin(DIM2, DIM)
    p["wo"], p["bo"] = lin(DIM, DIM)

    p["ln1_g"] = jnp.ones((1, DIM), jnp.float32)
    p["ln1_b"] = jnp.zeros((1, DIM), jnp.float32)
    p["w1"], p["b1"] = lin(DIM, FF_DIM)
    p["w2"], p["b2"] = lin(FF_DIM, DIM)

    p["ln2_g"] = jnp.ones((1, DIM), jnp.float32)
    p["ln2_b"] = jnp.zeros((1, DIM), jnp.float32)
    p["wl"], p["bl"] = lin(DIM, DIM_OUT)
    return p


# --------------------------------- main -------------------------------------------------
if __name__ == "__main__":
    key = jax.random.PRNGKey(0)
    kp, kc, kn, kcond = jax.random.split(key, 4)

    params = init_params(kp)
    w32, w64 = pack_params(params)          # one-time offline packing / folding

    # x_categ[:, i] in [0, CATEGORIES[i])
    cat_cols = [
        jax.random.randint(jax.random.fold_in(kc, i), (BATCH,), 0, ncat, jnp.int32)
        for i, ncat in enumerate(CATEGORIES)
    ]
    x_categ = jnp.stack(cat_cols, axis=-1)                                   # [B, 3]
    x_numer = jax.random.normal(kn, (BATCH, NUM_CONTINUOUS), jnp.float32)    # [B, 4]
    condition = jax.random.normal(kcond, (BATCH, DIM2), jnp.float32)         # [B, 256]

    logits = graph_mamba9_forward(x_categ, x_numer, condition, w32, w64)
    jax.block_until_ready(logits)

    ref = reference_forward(x_categ, x_numer, condition, params)
    np.testing.assert_allclose(np.asarray(logits), np.asarray(ref), rtol=2e-4, atol=2e-4)

    assert logits.shape == (BATCH, DIM_OUT)
    print("KERNEL_OK")
</pallas_src>

<mosaic_0001>
module attributes {stable_mosaic.version = 11 : i64} {
  func.func @fused_forward_kernel(%arg0: i32, %arg1: memref<8x8xf32, #tpu.memory_space<vmem>>, %arg2: memref<8x256xf32, #tpu.memory_space<vmem>>, %arg3: memref<344x32xf32, #tpu.memory_space<vmem>>, %arg4: memref<40x64xf32, #tpu.memory_space<vmem>>, %arg5: memref<8x1xf32, #tpu.memory_space<vmem>>) attributes {dimension_semantics = [#tpu.dimension_semantics<parallel>], iteration_bounds = array<i64: 1>, scalar_prefetch = 0 : i64, scratch_operands = 0 : i64, tpu.core_type = #tpu.core_type<tc>, window_params = [{transform_indices = @transform_0, window_bounds = array<i64: 8, 8>}, {transform_indices = @transform_1, window_bounds = array<i64: 8, 256>}, {pipeline_mode = #tpu.pipeline_mode<synchronous>, transform_indices = @transform_2, window_bounds = array<i64: 344, 32>}, {pipeline_mode = #tpu.pipeline_mode<synchronous>, transform_indices = @transform_3, window_bounds = array<i64: 40, 64>}, {transform_indices = @transform_4, window_bounds = array<i64: 8, 1>}]} {
    %c0 = arith.constant 0 : index
    %c0_0 = arith.constant 0 : index
    %0 = vector.load %arg1[%c0, %c0_0] : memref<8x8xf32, #tpu.memory_space<vmem>>, vector<8x8xf32>
    %1 = vector.extract_strided_slice %0 {offsets = [0, 4], sizes = [8, 3], strides = [1, 1]} : vector<8x8xf32> to vector<8x3xf32>
    %2 = arith.fptosi %1 : vector<8x3xf32> to vector<8x3xi32>
    %3 = tpu.iota {dimensions = array<i32: 1>} : vector<8x24xi32>
    %cst = arith.constant 0.000000e+00 : f32
    %4 = vector.broadcast %cst : f32 to vector<8x24xf32>
    %5 = vector.extract_strided_slice %2 {offsets = [0, 0], sizes = [8, 1], strides = [1, 1]} : vector<8x3xi32> to vector<8x1xi32>
    %c2_i32 = arith.constant 2 : i32
    %6 = vector.broadcast %c2_i32 : i32 to vector<8x1xi32>
    %7 = arith.addi %5, %6 : vector<8x1xi32>
    %8 = vector.broadcast %7 : vector<8x1xi32> to vector<8x24xi32>
    %9 = arith.cmpi eq, %3, %8 : vector<8x24xi32>
    %10 = arith.extui %9 : vector<8x24xi1> to vector<8x24xi32>
    %11 = arith.sitofp %10 : vector<8x24xi32> to vector<8x24xf32>
    %12 = arith.addf %4, %11 : vector<8x24xf32>
    %13 = vector.extract_strided_slice %2 {offsets = [0, 1], sizes = [8, 1], strides = [1, 1]} : vector<8x3xi32> to vector<8x1xi32>
    %c5_i32 = arith.constant 5 : i32
    %14 = vector.broadcast %c5_i32 : i32 to vector<8x1xi32>
    %15 = arith.addi %13, %14 : vector<8x1xi32>
    %16 = vector.broadcast %15 : vector<8x1xi32> to vector<8x24xi32>
    %17 = arith.cmpi eq, %3, %16 : vector<8x24xi32>
    %18 = arith.extui %17 : vector<8x24xi1> to vector<8x24xi32>
    %19 = arith.sitofp %18 : vector<8x24xi32> to vector<8x24xf32>
    %20 = arith.addf %12, %19 : vector<8x24xf32>
    %21 = vector.extract_strided_slice %2 {offsets = [0, 2], sizes = [8, 1], strides = [1, 1]} : vector<8x3xi32> to vector<8x1xi32>
    %c9_i32 = arith.constant 9 : i32
    %22 = vector.broadcast %c9_i32 : i32 to vector<8x1xi32>
    %23 = arith.addi %21, %22 : vector<8x1xi32>
    %24 = vector.broadcast %23 : vector<8x1xi32> to vector<8x24xi32>
    %25 = arith.cmpi eq, %3, %24 : vector<8x24xi32>
    %26 = arith.extui %25 : vector<8x24xi1> to vector<8x24xi32>
    %27 = arith.sitofp %26 : vector<8x24xi32> to vector<8x24xf32>
    %28 = arith.addf %20, %27 : vector<8x24xf32>
    %c16_i32 = arith.constant 16 : i32
    %29 = vector.broadcast %c16_i32 : i32 to vector<8x24xi32>
    %30 = arith.cmpi eq, %3, %29 : vector<8x24xi32>
    %31 = vector.extract_strided_slice %0 {offsets = [0, 0], sizes = [8, 1], strides = [1, 1]} : vector<8x8xf32> to vector<8x1xf32>
    %32 = vector.shape_cast %31 : vector<8x1xf32> to vector<8x1xf32>
    %33 = vector.broadcast %32 : vector<8x1xf32> to vector<8x24xf32>
    %34 = arith.select %30, %33, %28 : vector<8x24xi1>, vector<8x24xf32>
    %c17_i32 = arith.constant 17 : i32
    %35 = vector.broadcast %c17_i32 : i32 to vector<8x24xi32>
    %36 = arith.cmpi eq, %3, %35 : vector<8x24xi32>
    %37 = vector.extract_strided_slice %0 {offsets = [0, 1], sizes = [8, 1], strides = [1, 1]} : vector<8x8xf32> to vector<8x1xf32>
    %38 = vector.shape_cast %37 : vector<8x1xf32> to vector<8x1xf32>
    %39 = vector.broadcast %38 : vector<8x1xf32> to vector<8x24xf32>
    %40 = arith.select %36, %39, %34 : vector<8x24xi1>, vector<8x24xf32>
    %c18_i32 = arith.constant 18 : i32
    %41 = vector.broadcast %c18_i32 : i32 to vector<8x24xi32>
    %42 = arith.cmpi eq, %3, %41 : vector<8x24xi32>
    %43 = vector.extract_strided_slice %0 {offsets = [0, 2], sizes = [8, 1], strides = [1, 1]} : vector<8x8xf32> to vector<8x1xf32>
    %44 = vector.shape_cast %43 : vector<8x1xf32> to vector<8x1xf32>
    %45 = vector.broadcast %44 : vector<8x1xf32> to vector<8x24xf32>
    %46 = arith.select %42, %45, %40 : vector<8x24xi1>, vector<8x24xf32>
    %c19_i32 = arith.constant 19 : i32
    %47 = vector.broadcast %c19_i32 : i32 to vector<8x24xi32>
    %48 = arith.cmpi eq, %3, %47 : vector<8x24xi32>
    %49 = vector.extract_strided_slice %0 {offsets = [0, 3], sizes = [8, 1], strides = [1, 1]} : vector<8x8xf32> to vector<8x1xf32>
    %50 = vector.shape_cast %49 : vector<8x1xf32> to vector<8x1xf32>
    %51 = vector.broadcast %50 : vector<8x1xf32> to vector<8x24xf32>
    %52 = arith.select %48, %51, %46 : vector<8x24xi1>, vector<8x24xf32>
    %c32 = arith.constant 32 : index
    %c0_1 = arith.constant 0 : index
    %53 = vector.load %arg4[%c32, %c0_1] : memref<40x64xf32, #tpu.memory_space<vmem>>, vector<8x64xf32>
    %c0_2 = arith.constant 0 : index
    %c0_3 = arith.constant 0 : index
    %54 = vector.load %arg3[%c0_2, %c0_3] : memref<344x32xf32, #tpu.memory_space<vmem>>, vector<24x32xf32>
    %cst_4 = arith.constant dense<0.000000e+00> : vector<8x32xf32>
    %55 = tpu.matmul %52, %54, %cst_4 {dimension_numbers = #tpu.dot_dimension_numbers<[1], [0], [0], [1], [0, 0, 1, 1], [], []>} : vector<8x24xf32>, vector<24x32xf32>, vector<8x32xf32> -> vector<8x32xf32>
    %c0_5 = arith.constant 0 : index
    %c0_6 = arith.constant 0 : index
    %56 = vector.load %arg2[%c0_5, %c0_6] : memref<8x256xf32, #tpu.memory_space<vmem>>, vector<8x256xf32>
    %c88 = arith.constant 88 : index
    %c0_7 = arith.constant 0 : index
    %57 = vector.load %arg3[%c88, %c0_7] : memref<344x32xf32, #tpu.memory_space<vmem>>, vector<256x32xf32>
    %cst_8 = arith.constant dense<0.000000e+00> : vector<8x32xf32>
    %58 = tpu.matmul %56, %57, %cst_8 {dimension_numbers = #tpu.dot_dimension_numbers<[1], [0], [0], [1], [0, 0, 1, 1], [], []>} : vector<8x256xf32>, vector<256x32xf32>, vector<8x32xf32> -> vector<8x32xf32>
    %59 = arith.addf %55, %58 : vector<8x32xf32>
    %60 = vector.extract_strided_slice %53 {offsets = [0, 0], sizes = [1, 32], strides = [1, 1]} : vector<8x64xf32> to vector<1x32xf32>
    %61 = vector.broadcast %60 : vector<1x32xf32> to vector<8x32xf32>
    %62 = arith.addf %59, %61 : vector<8x32xf32>
    %cst_9 = arith.constant dense<0.000000e+00> : vector<8xf32>
    %63 = vector.multi_reduction <add>, %62, %cst_9 [1] : vector<8x32xf32> to vector<8xf32>
    %64 = vector.shape_cast %63 : vector<8xf32> to vector<8x1xf32>
    %cst_10 = arith.constant 3.200000e+01 : f32
    %65 = vector.broadcast %cst_10 : f32 to vector<8x1xf32>
    %66 = arith.divf %64, %65 : vector<8x1xf32>
    %67 = vector.broadcast %66 : vector<8x1xf32> to vector<8x32xf32>
    %68 = arith.subf %62, %67 : vector<8x32xf32>
    %69 = arith.mulf %68, %68 : vector<8x32xf32>
    %cst_11 = arith.constant dense<0.000000e+00> : vector<8xf32>
    %70 = vector.multi_reduction <add>, %69, %cst_11 [1] : vector<8x32xf32> to vector<8xf32>
    %71 = vector.shape_cast %70 : vector<8xf32> to vector<8x1xf32>
    %cst_12 = arith.constant 3.200000e+01 : f32
    %72 = vector.broadcast %cst_12 : f32 to vector<8x1xf32>
    %73 = arith.divf %71, %72 : vector<8x1xf32>
    %cst_13 = arith.constant 9.99999974E-6 : f32
    %74 = vector.broadcast %cst_13 : f32 to vector<8x1xf32>
    %75 = arith.addf %73, %74 : vector<8x1xf32>
    %76 = math.rsqrt %75 : vector<8x1xf32>
    %77 = vector.broadcast %76 : vector<8x1xf32> to vector<8x32xf32>
    %78 = arith.mulf %68, %77 : vector<8x32xf32>
    %c0_14 = arith.constant 0 : index
    %c0_15 = arith.constant 0 : index
    %79 = vector.load %arg4[%c0_14, %c0_15] : memref<40x64xf32, #tpu.memory_space<vmem>>, vector<32x64xf32>
    %cst_16 = arith.constant dense<0.000000e+00> : vector<8x64xf32>
    %80 = tpu.matmul %78, %79, %cst_16 {dimension_numbers = #tpu.dot_dimension_numbers<[1], [0], [0], [1], [0, 0, 1, 1], [], []>} : vector<8x32xf32>, vector<32x64xf32>, vector<8x64xf32> -> vector<8x64xf32>
    %81 = vector.extract_strided_slice %53 {offsets = [1, 0], sizes = [1, 64], strides = [1, 1]} : vector<8x64xf32> to vector<1x64xf32>
    %82 = vector.broadcast %81 : vector<1x64xf32> to vector<8x64xf32>
    %83 = arith.addf %80, %82 : vector<8x64xf32>
    %cst_17 = arith.constant 5.000000e-01 : f32
    %84 = vector.broadcast %cst_17 : f32 to vector<8x64xf32>
    %85 = arith.mulf %84, %83 : vector<8x64xf32>
    %cst_18 = arith.constant 0.707106769 : f32
    %86 = vector.broadcast %cst_18 : f32 to vector<8x64xf32>
    %87 = arith.mulf %83, %86 : vector<8x64xf32>
    %88 = math.erf %87 : vector<8x64xf32>
    %cst_19 = arith.constant 1.000000e+00 : f32
    %89 = vector.broadcast %cst_19 : f32 to vector<8x64xf32>
    %90 = arith.addf %89, %88 : vector<8x64xf32>
    %91 = arith.mulf %85, %90 : vector<8x64xf32>
    %c24 = arith.constant 24 : index
    %c0_20 = arith.constant 0 : index
    %92 = vector.load %arg3[%c24, %c0_20] : memref<344x32xf32, #tpu.memory_space<vmem>>, vector<64x32xf32>
    %cst_21 = arith.constant dense<0.000000e+00> : vector<8x32xf32>
    %93 = tpu.matmul %91, %92, %cst_21 {dimension_numbers = #tpu.dot_dimension_numbers<[1], [0], [0], [1], [0, 0, 1, 1], [], []>} : vector<8x64xf32>, vector<64x32xf32>, vector<8x32xf32> -> vector<8x32xf32>
    %94 = vector.extract_strided_slice %53 {offsets = [2, 0], sizes = [1, 32], strides = [1, 1]} : vector<8x64xf32> to vector<1x32xf32>
    %95 = vector.broadcast %94 : vector<1x32xf32> to vector<8x32xf32>
    %96 = arith.addf %93, %95 : vector<8x32xf32>
    %97 = arith.addf %96, %62 : vector<8x32xf32>
    %cst_22 = arith.constant dense<0.000000e+00> : vector<8xf32>
    %98 = vector.multi_reduction <add>, %97, %cst_22 [1] : vector<8x32xf32> to vector<8xf32>
    %99 = vector.shape_cast %98 : vector<8xf32> to vector<8x1xf32>
    %cst_23 = arith.constant 3.200000e+01 : f32
    %100 = vector.broadcast %cst_23 : f32 to vector<8x1xf32>
    %101 = arith.divf %99, %100 : vector<8x1xf32>
    %102 = vector.broadcast %101 : vector<8x1xf32> to vector<8x32xf32>
    %103 = arith.subf %97, %102 : vector<8x32xf32>
    %104 = arith.mulf %103, %103 : vector<8x32xf32>
    %cst_24 = arith.constant dense<0.000000e+00> : vector<8xf32>
    %105 = vector.multi_reduction <add>, %104, %cst_24 [1] : vector<8x32xf32> to vector<8xf32>
    %106 = vector.shape_cast %105 : vector<8xf32> to vector<8x1xf32>
    %cst_25 = arith.constant 3.200000e+01 : f32
    %107 = vector.broadcast %cst_25 : f32 to vector<8x1xf32>
    %108 = arith.divf %106, %107 : vector<8x1xf32>
    %cst_26 = arith.constant 9.99999974E-6 : f32
    %109 = vector.broadcast %cst_26 : f32 to vector<8x1xf32>
    %110 = arith.addf %108, %109 : vector<8x1xf32>
    %111 = math.rsqrt %110 : vector<8x1xf32>
    %112 = vector.broadcast %111 : vector<8x1xf32> to vector<8x32xf32>
    %113 = arith.mulf %103, %112 : vector<8x32xf32>
    %114 = vector.extract_strided_slice %53 {offsets = [3, 0], sizes = [1, 32], strides = [1, 1]} : vector<8x64xf32> to vector<1x32xf32>
    %115 = vector.broadcast %114 : vector<1x32xf32> to vector<8x32xf32>
    %116 = arith.mulf %113, %115 : vector<8x32xf32>
    %cst_27 = arith.constant dense<0.000000e+00> : vector<8xf32>
    %117 = vector.multi_reduction <add>, %116, %cst_27 [1] : vector<8x32xf32> to vector<8xf32>
    %118 = vector.shape_cast %117 : vector<8xf32> to vector<8x1xf32>
    %119 = vector.extract_strided_slice %53 {offsets = [4, 0], sizes = [1, 1], strides = [1, 1]} : vector<8x64xf32> to vector<1x1xf32>
    %120 = vector.broadcast %119 : vector<1x1xf32> to vector<8x1xf32>
    %121 = arith.addf %118, %120 : vector<8x1xf32>
    %c0_28 = arith.constant 0 : index
    %c0_29 = arith.constant 0 : index
    %122 = vector.load %arg5[%c0_28, %c0_29] : memref<8x1xf32, #tpu.memory_space<vmem>>, vector<8x1xf32>
    tpu.vector_store %arg5[%c0_28, %c0_29], %121 {strides = array<i32>} : memref<8x1xf32, #tpu.memory_space<vmem>>, vector<8x1xf32>,
    return
  }
  func.func @transform_0(%arg0: i32) -> (i32, i32) {
    %c0_i32 = arith.constant 0 : i32
    %c0_i32_0 = arith.constant 0 : i32
    return %arg0, %c0_i32 : i32, i32
  }
  func.func @transform_1(%arg0: i32) -> (i32, i32) {
    %c0_i32 = arith.constant 0 : i32
    %c0_i32_0 = arith.constant 0 : i32
    return %arg0, %c0_i32 : i32, i32
  }
  func.func @transform_2(%arg0: i32) -> (i32, i32) {
    %c0_i32 = arith.constant 0 : i32
    %c0_i32_0 = arith.constant 0 : i32
    %c0_i32_1 = arith.constant 0 : i32
    return %c0_i32, %c0_i32_0 : i32, i32
  }
  func.func @transform_3(%arg0: i32) -> (i32, i32) {
    %c0_i32 = arith.constant 0 : i32
    %c0_i32_0 = arith.constant 0 : i32
    %c0_i32_1 = arith.constant 0 : i32
    return %c0_i32, %c0_i32_0 : i32, i32
  }
  func.func @transform_4(%arg0: i32) -> (i32, i32) {
    %c0_i32 = arith.constant 0 : i32
    %c0_i32_0 = arith.constant 0 : i32
    return %arg0, %c0_i32 : i32, i32
  }
}

</mosaic_0001>

<bundles_post_ra>
// kernel: graph_mamba9_forward.1
= control target key start
LH: loop header
LB: loop body
LE: loop exit
PB: predicated region body
PF: predicated region fallthrough
CT: control target
= control target key end

     0   :  { %v654_v0 = vmov 0   ;;  %v655_v1 = vmov 4   ;;  %v656_v20 = vmov 6   ;;  %v657_v30 = vmov 5   ;;  %s894_s0 = inlined_call_operand.vmem [shape: f32[8,8], index: 0, kind: input, shape index: {}]   ;;  %s895_s2 = inlined_call_operand.vmem [shape: f32[344,32], index: 2, kind: input, shape index: {}]   ;;  %s896_s1 = inlined_call_operand.vmem [shape: f32[8,256], index: 1, kind: input, shape index: {}]   ;;  %s897_s3 = inlined_call_operand.vmem [shape: f32[40,64], index: 3, kind: input, shape index: {}]   ;;  %s898_s4 = inlined_call_operand.vmem [shape: f32[8,1], index: 4, kind: output, shape index: {}]  }
   0x1   :  { %640 = vset.pattern.permute.xlu1 %v654_v0  ;;  %641 = vset.pattern.permute.xlu0 %v655_v1  ;;  %v692_v2 = vld [vmem:[%s894_s0] sm:$0xff]  ;;  %v92_v3 = vld [vmem:[%s895_s2 + $0xd8] sm:$0xff]  ;;  %v94_v9 = vld [vmem:[%s895_s2 + $0xe8] sm:$0xff]  ;;  %v658_v31 = vmov 1   ;;  %v659_v42 = vmov 2   ;;  %v660_v43 = vmov 3  }
   0x2   :  { %v93_v4 = vld [vmem:[%s895_s2 + $0xe0] sm:$0xff]  ;;  %48 = vperm.xlu1 %640, %v692_v2   ;;  %v628_v5 = vtrunc.f32 %v692_v2  ;;  %v76_v7 = vld [vmem:[%s895_s2 + $0x58] sm:$0xff]  ;;  %v95_v11 = vld [vmem:[%s895_s2 + $0xf0] sm:$0xff]  ;;  %v661_v49 = vmov 0.0|0.0   ;;  %v662_v55 = vmov 0.0   ;;  %vm663_vm0 = vmmov 0  }
   0x3   :  { %v575_v6 = vpack.c.bf16 %v93_v4, %v92_v3  ;;  %v77_v8 = vld [vmem:[%s895_s2 + $0x60] sm:$0xff]  ;;  %v78_v12 = vld [vmem:[%s895_s2 + $0x68] sm:$0xff]  ;;  %v79_v13 = vld [vmem:[%s895_s2 + $0x70] sm:$0xff]  ;;  %v579_v15 = vpack.c.bf16 %v95_v11, %v94_v9  ;;  %607 = vmatprep.subr.bf16.mxu1 %v661_v49  ;;  %542 = vmatprep.mubr.msk.f32.mxu1 %vm663_vm0, %v662_v55  ;;  %vm178_vm8 = vcmask 195584   ;;  %vm257_vm9 = vcmask 261120  }
   0x4   :  { %v577_v10 = vpack.c.bf16 %v77_v8, %v76_v7  ;;  %v629_v14 = vcvt.f32.s32 %v628_v5  ;;  %v96_v16 = vld [vmem:[%s895_s2 + $0xf8] sm:$0xff]  ;;  %v97_v17 = vld [vmem:[%s895_s2 + $0x100] sm:$0xff]  ;;  %v581_v18 = vpack.c.bf16 %v79_v13, %v78_v12  ;;  %v98_v25 = vld [vmem:[%s895_s2 + $0x108] sm:$0xff]  ;;  %vm370_vm10 = vcmask 523264  }
   0x5   :  { %576 = vmatprep.subr.bf16.mxu0 %v575_v6  ;;  %v583_v22 = vpack.c.bf16 %v97_v17, %v96_v16  ;;  %v80_v23 = vld [vmem:[%s895_s2 + $0x78] sm:$0xff]  ;;  %v81_v24 = vld [vmem:[%s895_s2 + $0x80] sm:$0xff]  ;;  %v99_v26 = vld [vmem:[%s895_s2 + $0x110] sm:$0xff]  ;;  %v19_v6 = vlaneseq  ;;  %vm471_vm11 = vcmask 7168  }
   0x6   :  { %578 = vmatpush3.bf16.msra.mxu0 %v577_v10  ;;  %v21_v19 = vadd.s32 2, %v629_v14  ;;  %643 = vset.pattern.permute.xlu1 %v656_v20  ;;  %v37_v21 = vadd.s32 9, %v629_v14  ;;  %v29_v27 = vadd.s32 5, %v629_v14  ;;  %v585_v28 = vpack.c.bf16 %v81_v24, %v80_v23  ;;  %v82_v32 = vld [vmem:[%s895_s2 + $0x88] sm:$0xff]  ;;  %v83_v33 = vld [vmem:[%s895_s2 + $0x90] sm:$0xff]  ;;  %v100_v34 = vld [vmem:[%s895_s2 + $0x118] sm:$0xff] }
   0x7   :  { %580 = vmatprep.subr.bf16.mxu0 %v579_v15  ;;  %v587_v29 = vpack.c.bf16 %v99_v26, %v98_v25  ;;  %v101_v35 = vld [vmem:[%s895_s2 + $0x120] sm:$0xff]  ;;  %v589_v36 = vpack.c.bf16 %v83_v33, %v82_v32  ;;  %v72_v38 = vld [vmem:[%s895_s2 + $0x8] sm:$0xff]  ;;  %v84_v40 = vld [vmem:[%s895_s2 + $0x98] sm:$0xff]  ;;  %v20_v7 = vand.u32 127, %v19_v6  ;;  %v820_v26 = vshrl.u32 %v19_v6, 7 }
   0x8   :  { %23 = vperm.xlu0 %641, %v21_v19   ;;  %39 = vperm.xlu1 %643, %v37_v21   ;;  %v71_v37 = vld [vmem:[%s895_s2] sm:$0xff]  ;;  %v591_v39 = vpack.c.bf16 %v101_v35, %v100_v34  ;;  %v102_v44 = vld [vmem:[%s895_s2 + $0x128] sm:$0xff]  ;;  %v103_v45 = vld [vmem:[%s895_s2 + $0x130] sm:$0xff] }
   0x9   :  { %v85_v41 = vld [vmem:[%s895_s2 + $0xa0] sm:$0xff]  ;;  %v75_v46 = vld [vmem:[%s896_s1 + $0x8] sm:$0xff]  ;;  %v608_v47 = vpack.c.bf16 %v72_v38, %v71_v37  ;;  %v595_v50 = vpack.c.bf16 %v103_v45, %v102_v44  ;;  %v87_v52 = vld [vmem:[%s895_s2 + $0xb0] sm:$0xff]  ;;  %vm45_vm4 = vcmp.eq.s32.totalorder %v20_v7, 16  ;;  %vm52_vm5 = vcmp.eq.s32.totalorder %v20_v7, 17 }
   0xa   :  { %582 = vmatpush3.bf16.msra.mxu0 %v581_v18  ;;  %v593_v48 = vpack.c.bf16 %v85_v41, %v84_v40  ;;  %v86_v51 = vld [vmem:[%s895_s2 + $0xa8] sm:$0xff]  ;;  %172 = vmatprep.mubr.f32.mxu0 %v75_v46  ;;  %v104_v53 = vld [vmem:[%s895_s2 + $0x138] sm:$0xff]  ;;  %v105_v54 = vld [vmem:[%s895_s2 + $0x140] sm:$0xff]  ;;  %vm58_vm6 = vcmp.eq.s32.totalorder %v20_v7, 18  ;;  %vm64_vm7 = vcmp.eq.s32.totalorder %v20_v7, 19 }
   0xb   :  { %584 = vmatprep.subr.bf16.mxu0 %v583_v22  ;;  %609 = vmatpush3.bf16.msra.mxu1 %v608_v47  ;;  %v73_v56 = vld [vmem:[%s895_s2 + $0x10] sm:$0xff]  ;;  %v597_v57 = vpack.c.bf16 %v87_v52, %v86_v51  ;;  %v599_v58 = vpack.c.bf16 %v105_v54, %v104_v53  ;;  %v88_v59 = vld [vmem:[%s895_s2 + $0xb8] sm:$0xff]  ;;  %v89_v60 = vld [vmem:[%s895_s2 + $0xc0] sm:$0xff] }
   0xc   :  { %642 = vset.pattern.permute.xlu0 %v657_v30  ;;  %644 = vset.pattern.permute.xlu1 %v658_v31  ;;  %v106_v61 = vld [vmem:[%s895_s2 + $0x148] sm:$0xff]  ;;  %v107_v62 = vld [vmem:[%s895_s2 + $0x150] sm:$0xff]  ;;  %v601_v63 = vpack.c.bf16 %v89_v60, %v88_v59  ;;  %v74_v4 = vld [vmem:[%s896_s1] sm:$0xff] }
   0xd   :  { %31 = vperm.xlu0 %642, %v29_v27   ;;  %54 = vperm.xlu1 %644, %v692_v2   ;;  %v603_v0 = vpack.c.bf16 %v107_v62, %v106_v61  ;;  %v90_v1 = vld [vmem:[%s895_s2 + $0xc8] sm:$0xff]  ;;  %v254_v27 = vsub.s32 0, %v820_v26  ;;  %v272_v40 = vld [vmem:[%s897_s3] sm:$0xff]  ;;  %v275_v44 = vld [vmem:[%s897_s3 + $0x18] sm:$0xff] }
   0xe   :  { %586 = vmatpush3.bf16.msra.mxu0 %v585_v28  ;;  %540 = vmatprep.subr.mxu1 %v662_v55  ;;  %v826_v28 = vld [vmem:[%s897_s3 + $0x20] sm:$0xff]  ;;  %v273_v41 = vld [vmem:[%s897_s3 + $0x8] sm:$0xff]  ;;  %v358_v52 = vld [vmem:[%s895_s2 + $0x18] sm:$0xff] }
   0xf   :  { %588 = vmatprep.subr.bf16.mxu0 %v587_v29  ;;  %541 = vmatpush3.msra.mxu1 %v73_v56  ;;  %v255_v29 = vrot.slane %v826_v28, %v254_v27  ;;  %v359_v53 = vld [vmem:[%s895_s2 + $0x20] sm:$0xff]  ;;  %v360_v56 = vld [vmem:[%s895_s2 + $0x28] sm:$0xff]  ;;  %v365_v62 = vld [vmem:[%s895_s2 + $0x50] sm:$0xff] }
  0x10   :  { %610 = vmatprep.subr.bf16.mxu1 %v661_v49  ;;  %v617_v54 = vpack.c.bf16 %v359_v53, %v358_v52  ;;  %v363_v59 = vld [vmem:[%s895_s2 + $0x40] sm:$0xff]  ;;  %v364_v61 = vld [vmem:[%s895_s2 + $0x48] sm:$0xff] }
  0x11   :  { %645 = vset.pattern.permute.xlu0 %v659_v42  ;;  %646 = vset.pattern.permute.xlu1 %v660_v43  ;;  %v274_v42 = vld [vmem:[%s897_s3 + $0x10] sm:$0xff] }
  0x12   :  { %60 = vperm.xlu0 %645, %v692_v2   ;;  %66 = vperm.xlu1 %646, %v692_v2   ;;  %v91_v2 = vld [vmem:[%s895_s2 + $0xd0] sm:$0xff]  ;;  %v614_v45 = vpack.c.bf16 %v275_v44, %v274_v42 }
  0x13   :  { %590 = vmatpush3.bf16.msra.mxu0 %v589_v36  ;;  %v605_v3 = vpack.c.bf16 %v91_v2, %v90_v1 }
  0x14   :  { %592 = vmatprep.subr.bf16.mxu0 %v591_v39 }
  0x16   :  { %647 = vset.pattern.permute.xlu0 %v660_v43  ;;  %v611_v43 = vpack.c.bf16 %v273_v41, %v272_v40 }
  0x17   :  { %594 = vmatpush3.bf16.msra.mxu0 %v593_v48 }
  0x18   :  { %596 = vmatprep.subr.bf16.mxu0 %v595_v50 }
  0x1b   :  { %598 = vmatpush3.bf16.msra.mxu0 %v597_v57 }
  0x1c   :  { %600 = vmatprep.subr.bf16.mxu0 %v599_v58  ;;  %v362_v58 = vld [vmem:[%s895_s2 + $0x38] sm:$0xff] }
  0x1d   :  { %v623_v60 = vpack.c.bf16 %v363_v59, %v362_v58 }
  0x1f   :  { %602 = vmatpush3.bf16.msra.mxu0 %v601_v63  ;;  %v626_v63 = vpack.c.bf16 %v365_v62, %v364_v61 }
  0x20   :  { %604 = vmatprep.subr.bf16.mxu0 %v603_v0  ;;  %v278_v0 = vsub.s32 1, %v820_v26 }
  0x22   :  { %v279_v1 = vrot.slane %v826_v28, %v278_v0 }
  0x23   :  { %606 = vmatpush3.bf16.msra.mxu0 %v605_v3 }
  0x26   :  { %173 = vmatmul.mubr.f32.vlgmr.msra.gmra.mrb[0].mxu0 %v74_v4 }
  0x81   :  { %v49_v5 = vpop.permute.xlu1 %48 }
  0x87   :  { %v24_v8 = vpop.permute.xlu0 %23  ;;  %v40_v9 = vpop.permute.xlu1 %39 }
  0x88   :  { %vm25_vm1 = vcmp.eq.s32.totalorder %v20_v7, %v24_v8  ;;  %vm41_vm2 = vcmp.eq.s32.totalorder %v20_v7, %v40_v9  ;;  %v368_v9 = vsub.s32 2, %v820_v26 }
  0x89   :  { %v477_v12 = vsel %vm25_vm1, 1.0, %v662_v55  ;;  %v479_v15 = vsel %vm41_vm2, 1.0, %v662_v55 }
  0x8c   :  { %v32_v10 = vpop.permute.xlu0 %31  ;;  %v55_v11 = vpop.permute.xlu1 %54 }
  0x8d   :  { %vm33_vm3 = vcmp.eq.s32.totalorder %v20_v7, %v32_v10  ;;  %v369_v10 = vrot.slane %v826_v28, %v368_v9 }
  0x8e   :  { %v478_v13 = vsel %vm33_vm3, 1.0, %v662_v55 }
  0x8f   :  { %v36_v14 = vadd.f32 %v478_v13, %v477_v12 }
  0x91   :  { %v44_v16 = vadd.f32 %v479_v15, %v36_v14  ;;  %v61_v17 = vpop.permute.xlu0 %60  ;;  %v67_v19 = vpop.permute.xlu1 %66 }
  0x93   :  { %v51_v18 = vsel %vm45_vm4, %v49_v5, %v44_v16 }
  0x94   :  { %v57_v20 = vsel %vm52_vm5, %v55_v11, %v51_v18 }
  0x95   :  { %v63_v21 = vsel %vm58_vm6, %v61_v17, %v57_v20 }
  0x96   :  { %v69_v22 = vsel %vm64_vm7, %v67_v19, %v63_v21 }
  0x97   :  { %543 = vmatmul.mubr.msk.f32.vlgmr.msra.gmra.mrb[0].mxu1 %vm178_vm8, %v69_v22 }
  0x98   :  { %553 = vmatprep.mubr.msk.f32.mxu1 %vm663_vm0, %v662_v55  ;;  %612 = vmatpush3.bf16.msra.mxu1 %v611_v43 }
  0x99   :  { %613 = vmatprep.subr.bf16.mxu1 %v661_v49 }
  0x9c   :  { %615 = vmatpush3.bf16.msra.mxu1 %v614_v45 }
  0x9d   :  { %616 = vmatprep.subr.bf16.mxu1 %v661_v49 }
  0xf9   :  { %v515_v23 = vpop.f32.mrb[0].mxu0 }
  0xfa   :  { %v516_v24 = vpop.f32.mrb[1].mxu0 }
  0xfb   :  { %v517_v25 = vadd.f32 %v516_v24, %v515_v23  ;;  %v460_v24 = vsub.s32 3, %v820_v26 }
 0x16a   :  { %v248_v30 = vpop.f32.mrb[0].mxu1 }
 0x16b   :  { %v249_v31 = vadd.f32 %v517_v25, %v248_v30  ;;  %v544_v32 = vpop.f32.mrb[1].mxu1  ;;  %v461_v25 = vrot.slane %v826_v28, %v460_v24 }
 0x16c   :  { %v468_v32 = vsub.s32 4, %v820_v26 }
 0x16d   :  { %v829_v33 = vadd.f32 %v255_v29, %v249_v31 }
 0x16f   :  { %v258_v34 = vsel %vm257_vm9, %v829_v33, 0.0 }
 0x170   :  { %259 = vadd.xlane.f32.xlu1 %v258_v34 }
 0x1fd   :  { %v260_v35 = vpop.xlane.xlu1 %259 }
 0x1fe   :  { %v262_v36 = vmul.f32 0.03125, %v260_v35 }
 0x200   :  { %v263_v37 = vsub.f32 %v829_v33, %v262_v36 }
 0x202   :  { %v264_v38 = vmul.f32 %v263_v37, %v263_v37 }
 0x204   :  { %v265_v39 = vsel %vm257_vm9, %v264_v38, 0.0 }
 0x205   :  { %266 = vadd.xlane.f32.xlu0 %v265_v39 }
 0x292   :  { %v267_v46 = vpop.xlane.xlu0 %266 }
 0x293   :  { %v268_v47 = vmul.f32 0.03125, %v267_v46 }
 0x295   :  { %v269_v48 = vadd.f32 1e-05, %v268_v47 }
 0x297   :  { %648 = vrsqrt.f32 %v269_v48 }
 0x2a1   :  { %v649_v50 = vpop.eup %648 }
 0x2a2   :  { %v271_v51 = vmul.f32 %v649_v50, %v263_v37 }
 0x2a4   :  { %554 = vmatmul.mubr.msk.f32.vlgmr.msra.gmra.mrb[2].mxu1 %vm257_vm9, %v271_v51 }
 0x2a5   :  { %572 = vmatprep.mubr.msk.f32.mxu1 %vm663_vm0, %v662_v55  ;;  %618 = vmatpush3.bf16.msra.mxu1 %v617_v54  ;;  %v361_v55 = vld [vmem:[%s895_s2 + $0x30] sm:$0xff] }
 0x2a6   :  { %619 = vmatprep.subr.bf16.mxu1 %v661_v49  ;;  %v620_v57 = vpack.c.bf16 %v361_v55, %v360_v56 }
 0x2a9   :  { %621 = vmatpush3.bf16.msra.mxu1 %v620_v57 }
 0x2aa   :  { %622 = vmatprep.subr.bf16.mxu1 %v661_v49 }
 0x2ad   :  { %624 = vmatpush3.bf16.msra.mxu1 %v623_v60 }
 0x2ae   :  { %625 = vmatprep.subr.bf16.mxu1 %v661_v49 }
 0x2b1   :  { %627 = vmatpush3.bf16.msra.mxu1 %v626_v63 }
 0x377   :  { %v349_v2 = vpop.f32.mrb[2].mxu1 }
 0x378   :  { %v350_v3 = vadd.f32 %v349_v2, %v279_v1  ;;  %v555_v4 = vpop.f32.mrb[3].mxu1 }
 0x37a   :  { %v354_v5 = vmul.f32 0.70710677, %v350_v3  ;;  %v353_v6 = vmul.f32 0.5, %v350_v3 }
 0x37c   :  { %650 = verf.f32 %v354_v5 }
 0x386   :  { %v651_v49 = vpop.eup %650 }
 0x387   :  { %v356_v7 = vadd.f32 1.0, %v651_v49 }
 0x389   :  { %v357_v8 = vmul.f32 %v356_v7, %v353_v6 }
 0x38b   :  { %573 = vmatmul.mubr.msk.f32.vlgmr.msra.gmra.mrb[4].mxu1 %vm370_vm10, %v357_v8 }
 0x45e   :  { %v440_v11 = vpop.f32.mrb[4].mxu1 }
 0x45f   :  { %v441_v12 = vadd.f32 %v440_v11, %v369_v10  ;;  %v574_v13 = vpop.f32.mrb[5].mxu1 }
 0x461   :  { %v444_v14 = vadd.f32 %v441_v12, %v829_v33  ;;  %v469_v33 = vrot.slane %v826_v28, %v468_v32 }
 0x463   :  { %v445_v15 = vsel %vm257_vm9, %v444_v14, 0.0 }
 0x464   :  { %446 = vadd.xlane.f32.xlu0 %v445_v15 }
 0x4f1   :  { %v447_v16 = vpop.xlane.xlu0 %446 }
 0x4f2   :  { %v448_v17 = vmul.f32 0.03125, %v447_v16 }
 0x4f4   :  { %v449_v18 = vsub.f32 %v444_v14, %v448_v17 }
 0x4f6   :  { %v450_v19 = vmul.f32 %v449_v18, %v449_v18 }
 0x4f8   :  { %v451_v20 = vsel %vm257_vm9, %v450_v19, 0.0 }
 0x4f9   :  { %452 = vadd.xlane.f32.xlu1 %v451_v20 }
 0x586   :  { %v453_v21 = vpop.xlane.xlu1 %452 }
 0x587   :  { %v454_v22 = vmul.f32 0.03125, %v453_v21 }
 0x589   :  { %v455_v23 = vadd.f32 1e-05, %v454_v22 }
 0x58b   :  { %652 = vrsqrt.f32 %v455_v23 }
 0x595   :  { %v653_v27 = vpop.eup %652 }
 0x596   :  { %v457_v29 = vmul.f32 %v653_v27, %v449_v18 }
 0x598   :  { %v462_v30 = vmul.f32 %v461_v25, %v457_v29 }
 0x59a   :  { %v463_v31 = vsel %vm257_vm9, %v462_v30, 0.0 }
 0x59b   :  { %464 = vadd.xlane.f32.xlu0 %v463_v31 }
 0x628   :  { %v465_v34 = vpop.xlane.xlu0 %464 }
 0x629   :  { %v470_v35 = vadd.f32 %v469_v33, %v465_v34 }
 0x62b   :  { %472 = vst.msk [vmem:[%s898_s4] sm:$0xff] %vm471_vm11, %v470_v35 }

</bundles_post_ra>
